<compile_context>
chip_gen: v7x
topology: tpu7x:2x2x1
jax: 0.10.0
libtpu: 0.0.40
codegen_flags: <defaults>
</compile_context>

<pallas_src>
import jax
import jax.numpy as jnp
from jax.experimental import pallas as pl
from jax.experimental.pallas import tpu as pltpu


def _toy_kernel(xy_ref, o_ref):
    # xy_ref: (2, 1, N) f32 in VMEM; row 0 is x, row 1 is y (lane-major).
    prod = xy_ref[0] * xy_ref[1]                      # (1, N) VALU multiply
    relu = jnp.maximum(prod, 0.0)                     # (1, N) VALU max
    # Hoist the /2 past the reduction: scalar multiply after the XLU sum.
    o_ref[0, 0] = jnp.sum(relu) * 0.5                 # scalar -> (1,1) SMEM


def _toy_pallas(xy):
    # Gridless call: whole stacked array is a single VMEM block, scalar out
    # in SMEM (4-byte result; avoids masked partial vector stores).
    return pl.pallas_call(
        _toy_kernel,
        out_shape=jax.ShapeDtypeStruct((1, 1), jnp.float32),
        in_specs=[pl.BlockSpec(memory_space=pltpu.VMEM)],
        out_specs=pl.BlockSpec(memory_space=pltpu.SMEM),
    )(xy)


@jax.jit
def toy_forward(x, y):
    """Pallas equivalent of ToyModule.forward: sum(relu(x * y) / 2)."""
    assert x.shape == y.shape
    n = x.size
    # Lane-major (1, N) slabs, stacked into one (2, 1, N) input so the
    # launch-bound kernel needs a single input DMA. This reshape/stack is
    # trace-level layout plumbing fused by XLA, not extra kernel work.
    xy = jnp.stack(
        [x.reshape(1, n).astype(jnp.float32), y.reshape(1, n).astype(jnp.float32)],
        axis=0,
    )
    out = _toy_pallas(xy)
    # torch.sum returns a 0-d scalar tensor; reshape at trace level so it
    # fuses with the custom call's consumer instead of a separate slice op.
    return out.reshape(())


if __name__ == "__main__":
    key = jax.random.PRNGKey(0)
    kx, ky = jax.random.split(key)
    # mirrors: x = torch.rand(3, 4); y = torch.rand(3, 4)
    x = jax.random.uniform(kx, (3, 4), dtype=jnp.float32)
    y = jax.random.uniform(ky, (3, 4), dtype=jnp.float32)

    pred = toy_forward(x, y)
    jax.block_until_ready(pred)

    # correctness check against plain-JAX reference
    ref = jnp.sum(jnp.maximum(x * y, 0.0) / 2.0)
    assert jnp.allclose(pred, ref, rtol=1e-6, atol=1e-6), (pred, ref)

    print("KERNEL_OK")
</pallas_src>

<mosaic_0001>
module attributes {stable_mosaic.version = 11 : i64} {
  func.func @_toy_kernel(%arg0: memref<2x1x12xf32, #tpu.memory_space<vmem>>, %arg1: memref<1x1xf32, #tpu.memory_space<smem>>) attributes {dimension_semantics = [], scalar_prefetch = 0 : i64, scratch_operands = 0 : i64, tpu.core_type = #tpu.core_type<tc>} {
    %c0 = arith.constant 0 : index
    %c0_0 = arith.constant 0 : index
    %c0_1 = arith.constant 0 : index
    %0 = vector.load %arg0[%c0, %c0_0, %c0_1] : memref<2x1x12xf32, #tpu.memory_space<vmem>>, vector<1x1x12xf32>
    %1 = vector.shape_cast %0 : vector<1x1x12xf32> to vector<1x12xf32>
    %c1 = arith.constant 1 : index
    %c0_2 = arith.constant 0 : index
    %c0_3 = arith.constant 0 : index
    %2 = vector.load %arg0[%c1, %c0_2, %c0_3] : memref<2x1x12xf32, #tpu.memory_space<vmem>>, vector<1x1x12xf32>
    %3 = vector.shape_cast %2 : vector<1x1x12xf32> to vector<1x12xf32>
    %4 = arith.mulf %1, %3 : vector<1x12xf32>
    %cst = arith.constant 0.000000e+00 : f32
    %5 = vector.broadcast %cst : f32 to vector<1x12xf32>
    %6 = arith.maximumf %4, %5 : vector<1x12xf32>
    %7 = vector.shape_cast %6 : vector<1x12xf32> to vector<1x1x12xf32>
    %cst_4 = arith.constant dense<0.000000e+00> : vector<1xf32>
    %8 = vector.multi_reduction <add>, %7, %cst_4 [1, 2] : vector<1x1x12xf32> to vector<1xf32>
    %9 = vector.shape_cast %8 : vector<1xf32> to vector<1x1x1xf32>
    %10 = vector.extract %9[0, 0, 0] : f32 from vector<1x1x1xf32>
    %cst_5 = arith.constant 5.000000e-01 : f32
    %11 = arith.mulf %10, %cst_5 : f32
    %c0_6 = arith.constant 0 : index
    %c0_7 = arith.constant 0 : index
    %12 = memref.load %arg1[%c0_6, %c0_7] : memref<1x1xf32, #tpu.memory_space<smem>>
    memref.store %11, %arg1[%c0_6, %c0_7] : memref<1x1xf32, #tpu.memory_space<smem>>
    return
  }
}

</mosaic_0001>

<bundles_post_ra>
// kernel: toy_forward.1
= control target key start
LH: loop header
LB: loop body
LE: loop exit
PB: predicated region body
PF: predicated region fallthrough
CT: control target
= control target key end

     0   :  { %s86_s0 = inlined_call_operand.vmem [shape: f32[2,1,12], index: 0, kind: input, shape index: {}]   ;;  %s87_s1 = inlined_call_operand.hbm [shape: f32[1,1], index: 1, kind: output, shape index: {}]  }
   0x1   :  { %v9_v0 = vld [vmem:[%s86_s0] sm:$0x1]  ;;  %v41_v1 = vld [vmem:[%s86_s0 + $0x1] sm:$0x1] }
   0x2   :  { %v12_v2 = vmul.f32 %v41_v1, %v9_v0 }
   0x3   :  { %6 = vsyncpa [#allocation3], 0  ;;  %vm14_vm0 = vcmask 90112   ;;  %s45_s0 = scalar_lea.hbm %s87_s1, 16 }
   0x4   :  { %v13_v3 = vmax.f32 %v12_v2, 0.0  ;;  %p46_p0 = scmp.ne.s32.totalorder %s87_s1, %s45_s0  ;;  %p49_p1 = scmp.lt.u32.totalorder %s45_s0, %s87_s1 }
   0x6   :  { %v15_v4 = vsel %vm14_vm0, %v13_v3, 0.0  ;;  %p51_p2 = pnand %p49_p1, %p46_p0 }
   0x7   :  { %16 = vadd.xlane.f32.xlu0 %v15_v4 }
  0x94   :  { %v17_v5 = vpop.xlane.xlu0 %16 }
  0x95   :  { %v18_v6 = vrot.slane %v17_v5, 4 }
  0x97   :  { %v19_v7 = vadd.f32 %v18_v6, %v17_v5 }
  0x99   :  { %v20_v8 = vrot.slane %v19_v7, 2 }
  0x9b   :  { %v21_v9 = vadd.f32 %v20_v8, %v19_v7 }
  0x9d   :  { %v22_v10 = vrot.slane %v21_v9, 1 }
  0x9f   :  { %v23_v11 = vadd.f32 %v22_v10, %v21_v9 }
  0xa1   :  { %42 = vpush %v23_v11 }
  0xd2   :  { %s43_s10 = spop %42 }
  0xd3   :  { %s25_s11 = smul.f32 0.5, %s43_s10 }
  0xd5   :  { %27 = sst [smem:[#allocation2]] %s25_s11 }
  0xd6   :  { %54 = shalt.err (!%p51_p2)
}
  0xd7   :  { %s57_s18 = smov [#allocation2]  }
  0xd8   :  { %35 = dma.smem_to_hbm %s57_s18, 16, %s87_s1, [#allocation3]  }
  0xd9   :  { %55 = dma.done.wait [#allocation3], 16  }
  0xda   :  { %56 = vsyncadd [#allocation3], 4294967280 }
  0xdb   :  { %39 = sfence }
  0xdc   :  { %40 = vsyncpa [#allocation3], 1 }

</bundles_post_ra>
